<compile_context>
chip_gen: v7x
topology: tpu7x:2x2x1
jax: 0.10.0
libtpu: 0.0.40
codegen_flags: <defaults>
</compile_context>

<pallas_src>
import functools
import math

import jax
import jax.numpy as jnp
from jax import lax
from jax.experimental import pallas as pl
from jax.experimental.pallas import tpu as pltpu

LANE = 128


def _round_up(x, m):
    return (x + m - 1) // m * m


def _vmem_limit(estimate_bytes):
    """Generation-aware VMEM request: ~75% of physical, never less than 32 MiB."""
    cap = 64 << 20  # assume the smallest per-core VMEM (v7x) if query fails
    try:
        info = pltpu.get_tpu_info()
        cap = int(getattr(info, "vmem_capacity_bytes", cap))
    except Exception:
        pass
    ceiling = (cap * 3) // 4
    return int(min(ceiling, max(2 * int(estimate_bytes), 32 << 20)))


# ---------------------------------------------------------------------------
# Kernel 1: fused QKV projection (one wide lane-dense matmul per seq tile).
# ---------------------------------------------------------------------------
def _qkv_proj_kernel(x_ref, w_ref, b_ref, q_ref, k_ref, v_ref, *, hidden_dim, h_pad):
    """x_ref: (1, ts, D_in); w_ref: (D_in, 3*h_pad); b_ref: (1, 3*h_pad) f32.
    Writes q (pre-scaled by 1/sqrt(H)), k, v tiles of shape (1, ts, h_pad)."""
    x = x_ref[0]                                                   # (ts, D_in)
    qkv = jnp.dot(x, w_ref[...], preferred_element_type=jnp.float32)
    qkv = qkv + b_ref[...]                                         # (ts, 3*h_pad) f32
    scale = 1.0 / math.sqrt(hidden_dim)
    q_ref[0] = (qkv[:, 0:h_pad] * scale).astype(q_ref.dtype)
    k_ref[0] = qkv[:, h_pad:2 * h_pad].astype(k_ref.dtype)
    v_ref[0] = qkv[:, 2 * h_pad:3 * h_pad].astype(v_ref.dtype)


# ---------------------------------------------------------------------------
# Kernel 2: flash attention with online softmax (key axis streamed).
# ---------------------------------------------------------------------------
def _flash_attn_kernel(q_ref, k_ref, v_ref, o_ref, m_sc, l_sc, acc_sc,
                       *, seq_len, tk, masked):
    ki = pl.program_id(2)

    @pl.when(ki == 0)
    def _():
        m_sc[...] = jnp.full(m_sc.shape, -jnp.inf, dtype=m_sc.dtype)
        l_sc[...] = jnp.zeros(l_sc.shape, dtype=l_sc.dtype)
        acc_sc[...] = jnp.zeros(acc_sc.shape, dtype=acc_sc.dtype)

    q = q_ref[0]          # (tq, h_pad), already scaled by 1/sqrt(H)
    k = k_ref[0]          # (tk, h_pad)
    v = v_ref[0]          # (tk, h_pad)

    # q @ k^T: contract the hidden axis.  The stationary K operand feeds the
    # MXU in transposed-push form, so no per-block XLU re-layout is required.
    s = lax.dot_general(q, k, (((1,), (1,)), ((), ())),
                        preferred_element_type=jnp.float32)        # (tq, tk)

    if masked:
        # Ragged tail of a padded sequence: mask keys >= seq_len.
        col = ki * tk + lax.broadcasted_iota(jnp.int32, s.shape, 1)
        s = jnp.where(col < seq_len, s, -jnp.inf)

    m_prev = m_sc[...]
    m_new = jnp.maximum(m_prev, jnp.max(s, axis=-1, keepdims=True))
    alpha = jnp.exp(m_prev - m_new)
    e = jnp.exp(s - m_new)                                         # un-normalized P
    l_sc[...] = alpha * l_sc[...] + jnp.sum(e, axis=-1, keepdims=True)
    acc_sc[...] = alpha * acc_sc[...] + jnp.dot(
        e.astype(v.dtype), v, preferred_element_type=jnp.float32)
    m_sc[...] = m_new

    @pl.when(ki == pl.num_programs(2) - 1)
    def _():
        # Normalize once on the (tq, h_pad) accumulator, not per (tq, tk) tile.
        o_ref[0] = (acc_sc[...] * pl.reciprocal(l_sc[...], approx=True)
                    ).astype(o_ref.dtype)


# ---------------------------------------------------------------------------
# Wrapper
# ---------------------------------------------------------------------------
def self_attention(x, wq, bq, wk, bk, wv, bv):
    """x: (B, S, D_in); wq/wk/wv: (D_in, H); bq/bk/bv: (H,) or (1, H) -> (B, S, H).

    Matches SelfAttention.forward(x, mask=None) with dropout p=0.0 (identity).
    """
    B, S, D_in = x.shape
    H = wq.shape[1]
    out_dtype = x.dtype
    h_pad = _round_up(H, LANE)

    # MXU operand dtype: bf16 for f32/bf16 inputs (bf16-native MXU), f32 acc.
    if x.dtype == jnp.float32 or x.dtype == jnp.bfloat16:
        cdt = jnp.bfloat16
    else:
        cdt = x.dtype

    # Sequence tiling: fixed, MXU-friendly tiles; pad the ragged tail instead
    # of collapsing to tiny query tiles.
    if S >= LANE:
        s_pad = _round_up(S, LANE)
        tile = 256 if s_pad % 256 == 0 else 128
    else:
        s_pad = _round_up(S, 8)
        tile = s_pad
    ts = tq = tk = tile
    masked = (s_pad != S)

    x_p = x
    if masked:
        x_p = jnp.pad(x_p, ((0, 0), (0, s_pad - S), (0, 0)))
    x_p = x_p.astype(cdt)

    def _prep_w(w):
        w = w.astype(cdt)
        if h_pad != H:
            w = jnp.pad(w, ((0, 0), (0, h_pad - H)))
        return w

    def _prep_b(b):
        b = jnp.asarray(b).reshape(1, -1).astype(jnp.float32)
        if h_pad != H:
            b = jnp.pad(b, ((0, 0), (0, h_pad - H)))
        return b

    w_qkv = jnp.concatenate([_prep_w(wq), _prep_w(wk), _prep_w(wv)], axis=1)  # (D_in, 3*h_pad)
    b_qkv = jnp.concatenate([_prep_b(bq), _prep_b(bk), _prep_b(bv)], axis=1)  # (1, 3*h_pad)

    isz_c = jnp.dtype(cdt).itemsize
    isz_o = jnp.dtype(out_dtype).itemsize

    # -------------------- 1) fused QKV projection kernel --------------------
    proj_est = (2 * ts * D_in * isz_c            # x blocks (double-buffered)
                + 2 * D_in * 3 * h_pad * isz_c   # fused weights
                + 2 * 3 * h_pad * 4              # fused bias (f32)
                + 2 * 3 * ts * h_pad * isz_c     # q/k/v output blocks
                + 2 * ts * 3 * h_pad * 4)        # f32 temporaries

    q_p, k_p, v_p = pl.pallas_call(
        functools.partial(_qkv_proj_kernel, hidden_dim=H, h_pad=h_pad),
        out_shape=(
            jax.ShapeDtypeStruct((B, s_pad, h_pad), cdt),
            jax.ShapeDtypeStruct((B, s_pad, h_pad), cdt),
            jax.ShapeDtypeStruct((B, s_pad, h_pad), cdt),
        ),
        grid_spec=pltpu.PrefetchScalarGridSpec(
            num_scalar_prefetch=0,
            grid=(B, s_pad // ts),
            in_specs=[
                pl.BlockSpec((1, ts, D_in), lambda b, i: (b, i, 0)),
                pl.BlockSpec((D_in, 3 * h_pad), lambda b, i: (0, 0)),
                pl.BlockSpec((1, 3 * h_pad), lambda b, i: (0, 0)),
            ],
            out_specs=(
                pl.BlockSpec((1, ts, h_pad), lambda b, i: (b, i, 0)),
                pl.BlockSpec((1, ts, h_pad), lambda b, i: (b, i, 0)),
                pl.BlockSpec((1, ts, h_pad), lambda b, i: (b, i, 0)),
            ),
        ),
        compiler_params=pltpu.CompilerParams(
            dimension_semantics=("parallel", "parallel"),
            vmem_limit_bytes=_vmem_limit(proj_est),
        ),
    )(x_p, w_qkv, b_qkv)

    # -------------------- 2) flash attention kernel --------------------------
    attn_est = (2 * (tq + 2 * tk) * h_pad * isz_c   # q/k/v blocks (double-buffered)
                + 2 * tq * h_pad * isz_o            # output blocks
                + tq * h_pad * 4 + 2 * tq * 128 * 4 # acc / m / l scratch
                + 4 * tq * tk * 4)                  # f32 score temporaries

    out_padded = pl.pallas_call(
        functools.partial(_flash_attn_kernel, seq_len=S, tk=tk, masked=masked),
        out_shape=jax.ShapeDtypeStruct((B, s_pad, h_pad), out_dtype),
        grid_spec=pltpu.PrefetchScalarGridSpec(
            num_scalar_prefetch=0,
            grid=(B, s_pad // tq, s_pad // tk),
            in_specs=[
                pl.BlockSpec((1, tq, h_pad), lambda b, qi, ki: (b, qi, 0)),
                pl.BlockSpec((1, tk, h_pad), lambda b, qi, ki: (b, ki, 0)),
                pl.BlockSpec((1, tk, h_pad), lambda b, qi, ki: (b, ki, 0)),
            ],
            out_specs=pl.BlockSpec((1, tq, h_pad), lambda b, qi, ki: (b, qi, 0)),
            scratch_shapes=[
                pltpu.VMEM((tq, 1), jnp.float32),      # running max m
                pltpu.VMEM((tq, 1), jnp.float32),      # running denom l
                pltpu.VMEM((tq, h_pad), jnp.float32),  # un-normalized PV acc
            ],
        ),
        compiler_params=pltpu.CompilerParams(
            dimension_semantics=("parallel", "parallel", "arbitrary"),
            vmem_limit_bytes=_vmem_limit(attn_est),
        ),
    )(q_p, k_p, v_p)

    out = out_padded
    if masked:
        out = out[:, :S, :]
    if h_pad != H:
        out = out[:, :, :H]
    return out


def _reference(x, wq, bq, wk, bk, wv, bv):
    q = x @ wq + bq.reshape(1, 1, -1)
    k = x @ wk + bk.reshape(1, 1, -1)
    v = x @ wv + bv.reshape(1, 1, -1)
    scores = jnp.einsum("bsh,bth->bst", q, k) / math.sqrt(q.shape[-1])
    w = jax.nn.softmax(scores, axis=-1)
    return jnp.einsum("bst,bth->bsh", w, v)


if __name__ == "__main__":
    B, D_IN, H = 2, 32, 32

    key = jax.random.PRNGKey(0)
    kx, kq, kbq, kk, kbk, kv, kbv, kx2 = jax.random.split(key, 8)

    # nn.Linear default init: U(-1/sqrt(in), 1/sqrt(in)) for weight and bias.
    bound = 1.0 / math.sqrt(D_IN)
    wq = jax.random.uniform(kq, (D_IN, H), jnp.float32, -bound, bound)
    bq = jax.random.uniform(kbq, (1, H), jnp.float32, -bound, bound)
    wk = jax.random.uniform(kk, (D_IN, H), jnp.float32, -bound, bound)
    bk = jax.random.uniform(kbk, (1, H), jnp.float32, -bound, bound)
    wv = jax.random.uniform(kv, (D_IN, H), jnp.float32, -bound, bound)
    bv = jax.random.uniform(kbv, (1, H), jnp.float32, -bound, bound)

    # Case 1: S divides the tile exactly.
    S1 = 8
    x1 = jax.random.normal(kx, (B, S1, D_IN), dtype=jnp.float32)
    out1 = jax.block_until_ready(self_attention(x1, wq, bq, wk, bk, wv, bv))
    ref1 = _reference(x1, wq, bq, wk, bk, wv, bv)
    assert out1.shape == (B, S1, H)
    # Tolerance covers bf16 MXU operands (f32 accumulation) and the EUP
    # approximate reciprocal in the softmax normalization.
    assert jnp.allclose(out1, ref1, atol=2e-2, rtol=2e-2), (
        float(jnp.max(jnp.abs(out1 - ref1))))

    # Case 2: ragged sequence length (exercises padding + key masking).
    S2 = 12
    x2 = jax.random.normal(kx2, (B, S2, D_IN), dtype=jnp.float32)
    out2 = jax.block_until_ready(self_attention(x2, wq, bq, wk, bk, wv, bv))
    ref2 = _reference(x2, wq, bq, wk, bk, wv, bv)
    assert out2.shape == (B, S2, H)
    assert jnp.allclose(out2, ref2, atol=2e-2, rtol=2e-2), (
        float(jnp.max(jnp.abs(out2 - ref2))))

    print("KERNEL_OK")
</pallas_src>

<mosaic_0001>
module attributes {stable_mosaic.version = 11 : i64} {
  func.func @_qkv_proj_kernel(%arg0: i32, %arg1: i32, %arg2: memref<1x8x32xbf16, #tpu.memory_space<vmem>>, %arg3: memref<32x384xbf16, #tpu.memory_space<vmem>>, %arg4: memref<1x384xf32, #tpu.memory_space<vmem>>, %arg5: memref<1x8x128xbf16, #tpu.memory_space<vmem>>, %arg6: memref<1x8x128xbf16, #tpu.memory_space<vmem>>, %arg7: memref<1x8x128xbf16, #tpu.memory_space<vmem>>) attributes {dimension_semantics = [#tpu.dimension_semantics<parallel>, #tpu.dimension_semantics<parallel>], iteration_bounds = array<i64: 2, 1>, scalar_prefetch = 0 : i64, scratch_operands = 0 : i64, tpu.core_type = #tpu.core_type<tc>, window_params = [{transform_indices = @transform_0, window_bounds = array<i64: 1, 8, 32>}, {pipeline_mode = #tpu.pipeline_mode<synchronous>, transform_indices = @transform_1, window_bounds = array<i64: 32, 384>}, {pipeline_mode = #tpu.pipeline_mode<synchronous>, transform_indices = @transform_2, window_bounds = array<i64: 1, 384>}, {transform_indices = @transform_3, window_bounds = array<i64: 1, 8, 128>}, {transform_indices = @transform_4, window_bounds = array<i64: 1, 8, 128>}, {transform_indices = @transform_5, window_bounds = array<i64: 1, 8, 128>}]} {
    %c0 = arith.constant 0 : index
    %c0_0 = arith.constant 0 : index
    %c0_1 = arith.constant 0 : index
    %0 = vector.load %arg2[%c0, %c0_0, %c0_1] : memref<1x8x32xbf16, #tpu.memory_space<vmem>>, vector<1x8x32xbf16>
    %1 = vector.shape_cast %0 : vector<1x8x32xbf16> to vector<8x32xbf16>
    %c0_2 = arith.constant 0 : index
    %c0_3 = arith.constant 0 : index
    %2 = vector.load %arg3[%c0_2, %c0_3] : memref<32x384xbf16, #tpu.memory_space<vmem>>, vector<32x384xbf16>
    %cst = arith.constant dense<0.000000e+00> : vector<8x384xf32>
    %3 = tpu.matmul %1, %2, %cst {dimension_numbers = #tpu.dot_dimension_numbers<[1], [0], [0], [1], [0, 0, 1, 1], [], []>} : vector<8x32xbf16>, vector<32x384xbf16>, vector<8x384xf32> -> vector<8x384xf32>
    %c0_4 = arith.constant 0 : index
    %c0_5 = arith.constant 0 : index
    %4 = vector.load %arg4[%c0_4, %c0_5] : memref<1x384xf32, #tpu.memory_space<vmem>>, vector<1x384xf32>
    %5 = vector.broadcast %4 : vector<1x384xf32> to vector<8x384xf32>
    %6 = arith.addf %3, %5 : vector<8x384xf32>
    %7 = vector.extract_strided_slice %6 {offsets = [0, 0], sizes = [8, 128], strides = [1, 1]} : vector<8x384xf32> to vector<8x128xf32>
    %cst_6 = arith.constant 0.176776692 : f32
    %8 = vector.broadcast %cst_6 : f32 to vector<8x128xf32>
    %9 = arith.mulf %7, %8 : vector<8x128xf32>
    %10 = arith.truncf %9 : vector<8x128xf32> to vector<8x128xbf16>
    %c0_7 = arith.constant 0 : index
    %c0_8 = arith.constant 0 : index
    %c0_9 = arith.constant 0 : index
    %11 = vector.load %arg5[%c0_7, %c0_8, %c0_9] : memref<1x8x128xbf16, #tpu.memory_space<vmem>>, vector<1x8x128xbf16>
    %12 = vector.shape_cast %11 : vector<1x8x128xbf16> to vector<8x128xbf16>
    %13 = vector.shape_cast %10 : vector<8x128xbf16> to vector<1x8x128xbf16>
    tpu.vector_store %arg5[%c0_7, %c0_8, %c0_9], %13 {strides = array<i32>} : memref<1x8x128xbf16, #tpu.memory_space<vmem>>, vector<1x8x128xbf16>,
    %14 = vector.extract_strided_slice %6 {offsets = [0, 128], sizes = [8, 128], strides = [1, 1]} : vector<8x384xf32> to vector<8x128xf32>
    %15 = arith.truncf %14 : vector<8x128xf32> to vector<8x128xbf16>
    %c0_10 = arith.constant 0 : index
    %c0_11 = arith.constant 0 : index
    %c0_12 = arith.constant 0 : index
    %16 = vector.load %arg6[%c0_10, %c0_11, %c0_12] : memref<1x8x128xbf16, #tpu.memory_space<vmem>>, vector<1x8x128xbf16>
    %17 = vector.shape_cast %16 : vector<1x8x128xbf16> to vector<8x128xbf16>
    %18 = vector.shape_cast %15 : vector<8x128xbf16> to vector<1x8x128xbf16>
    tpu.vector_store %arg6[%c0_10, %c0_11, %c0_12], %18 {strides = array<i32>} : memref<1x8x128xbf16, #tpu.memory_space<vmem>>, vector<1x8x128xbf16>,
    %19 = vector.extract_strided_slice %6 {offsets = [0, 256], sizes = [8, 128], strides = [1, 1]} : vector<8x384xf32> to vector<8x128xf32>
    %20 = arith.truncf %19 : vector<8x128xf32> to vector<8x128xbf16>
    %c0_13 = arith.constant 0 : index
    %c0_14 = arith.constant 0 : index
    %c0_15 = arith.constant 0 : index
    %21 = vector.load %arg7[%c0_13, %c0_14, %c0_15] : memref<1x8x128xbf16, #tpu.memory_space<vmem>>, vector<1x8x128xbf16>
    %22 = vector.shape_cast %21 : vector<1x8x128xbf16> to vector<8x128xbf16>
    %23 = vector.shape_cast %20 : vector<8x128xbf16> to vector<1x8x128xbf16>
    tpu.vector_store %arg7[%c0_13, %c0_14, %c0_15], %23 {strides = array<i32>} : memref<1x8x128xbf16, #tpu.memory_space<vmem>>, vector<1x8x128xbf16>,
    return
  }
  func.func @transform_0(%arg0: i32, %arg1: i32) -> (i32, i32, i32) {
    %c0_i32 = arith.constant 0 : i32
    %c0_i32_0 = arith.constant 0 : i32
    return %arg0, %arg1, %c0_i32 : i32, i32, i32
  }
  func.func @transform_1(%arg0: i32, %arg1: i32) -> (i32, i32) {
    %c0_i32 = arith.constant 0 : i32
    %c0_i32_0 = arith.constant 0 : i32
    %c0_i32_1 = arith.constant 0 : i32
    return %c0_i32, %c0_i32_0 : i32, i32
  }
  func.func @transform_2(%arg0: i32, %arg1: i32) -> (i32, i32) {
    %c0_i32 = arith.constant 0 : i32
    %c0_i32_0 = arith.constant 0 : i32
    %c0_i32_1 = arith.constant 0 : i32
    return %c0_i32, %c0_i32_0 : i32, i32
  }
  func.func @transform_3(%arg0: i32, %arg1: i32) -> (i32, i32, i32) {
    %c0_i32 = arith.constant 0 : i32
    %c0_i32_0 = arith.constant 0 : i32
    return %arg0, %arg1, %c0_i32 : i32, i32, i32
  }
  func.func @transform_4(%arg0: i32, %arg1: i32) -> (i32, i32, i32) {
    %c0_i32 = arith.constant 0 : i32
    %c0_i32_0 = arith.constant 0 : i32
    return %arg0, %arg1, %c0_i32 : i32, i32, i32
  }
  func.func @transform_5(%arg0: i32, %arg1: i32) -> (i32, i32, i32) {
    %c0_i32 = arith.constant 0 : i32
    %c0_i32_0 = arith.constant 0 : i32
    return %arg0, %arg1, %c0_i32 : i32, i32, i32
  }
}

</mosaic_0001>

<bundles_post_ra>
// kernel: tpu_custom_call.1
= control target key start
LH: loop header
LB: loop body
LE: loop exit
PB: predicated region body
PF: predicated region fallthrough
CT: control target
= control target key end

     0   :  { %s1323_s0 = inlined_call_operand.hbm [shape: bf16[2,8,32], index: 0, kind: input, shape index: {}]   ;;  %s1324_s1 = inlined_call_operand.hbm [shape: bf16[32,384], index: 1, kind: input, shape index: {}]   ;;  %s1325_s2 = inlined_call_operand.vmem [shape: f32[1,384], index: 2, kind: input, shape index: {}]   ;;  %s1326_s3 = inlined_call_operand.hbm [shape: bf16[2,8,128], index: 3, kind: output, shape index: {0}]   ;;  %s1327_s4 = inlined_call_operand.hbm [shape: bf16[2,8,128], index: 4, kind: output, shape index: {1}]   ;;  %s1328_s5 = inlined_call_operand.hbm [shape: bf16[2,8,128], index: 5, kind: output, shape index: {2}]  }
   0x1   :  { %1334 = sst [smem:[#allocation15_spill]] %s1323_s0 }
   0x2   :  { %1335 = sst [smem:[#allocation16_spill]] %s1324_s1 }
   0x3   :  { %1336 = sst [smem:[#allocation17_spill]] %s1325_s2 }
   0x4   :  { %11 = vsyncpa [#allocation3], 0 }
   0x5   :  { %13 = vsyncpa [#allocation3 + $0x1], 0 }
   0x6   :  { %14 = vsyncpa [#allocation6], 0 }
   0x7   :  { %15 = vsyncpa [#allocation4], 0 }
   0x8   :  { %17 = vsyncpa [#allocation4 + $0x1], 0 }
   0x9   :  { %18 = vsyncpa [#allocation9], 0 }
   0xa   :  { %20 = vsyncpa [#allocation9 + $0x1], 0  ;;  %s1033_s18 = smov 0   ;;  %s1035_s19 = smov 0  }
   0xb   :  { %s1037_s20 = smov 0   ;;  %s1039_s21 = smov 0  }
   0xc   :  { %s1041_s22 = smov 0   ;;  %s1043_s23 = smov 0  }
   0xd LB: > { %s1064_s24 = sadd.s32 4294967295, %s991_s23   ;;  %s1332_s25 = sadd.s32 4294967294, %s991_s23   ;;  %s991_s23 = sphi %s1043_s23, %s26_s23   ;;  %s987_s22 = sphi %s1041_s22, %s1361_s22   ;;  %s983_s21 = sphi %s1039_s21, %s1360_s21   ;;  %s979_s20 = sphi %s1037_s20, %s1359_s20   ;;  %s975_s19 = sphi %s1035_s19, %s1358_s19   ;;  %s971_s18 = sphi %s1033_s18, %s1357_s18  }
   0xe   : > { %p60_p0 = scmp.ne.s32.totalorder %s975_s19, %s971_s18  ;;  %p1329_p1 = scmp.eq.s32.totalorder %s1064_s24, 0 }
   0xf   : > { %p134_p3 = scmp.eq.s32.totalorder %s1332_s25, 1  ;;  %p653_p5 = scmp.ge.s32.totalorder %s991_s23, 1 }
  0x10   : > { %p1075_p4 = por %p1329_p1, %p60_p0  ;;  %p197_p7 = scmp.lt.s32.totalorder %s991_s23, 3 }
  0x11   : > { %p1080_p6 = por %p134_p3, %p60_p0  ;;  %s993_s29 = smov [#allocation5]  }
  0x12   : > { %s1337_s26 = scalar_select %p1075_p4, 1, 0 }
  0x13   : > { %s1338_s27 = scalar_select %p1080_p6, 1, 0 }
  0x14   : > { %p1085_p8 = pnand %p653_p5, %p197_p7  ;;  %s209_s30 = sshll.u32 %s993_s29, 4  ;;  %s210_s30 = int_to_ptr.vmem [resolvable:$true] %s209_s30 }
  0x15   : > { %s38_s7 = sadd.s32 1, %s987_s22  ;;  %s1341_s1 = sld [smem:[#allocation16_spill]] }
  0x16   : > { %s1339_s28 = scalar_select %p1085_p8, 1, 0 }
  0x17   : > { %p703_p9 = pneg %p1085_p8 }
  0x19   : > { %p1094_p11 = pnand %p703_p9, %p1329_p1 }
  0x1b   : > { %s787_s10 = scalar_lea.hbm %s1341_s1, 768  ;;  %p789_p13 = pneg %p1094_p11 }
  0x1c   : > { %p788_p12 = scmp.ne.s32.totalorder %s1341_s1, %s787_s10  ;;  %p794_p5 = scmp.lt.u32.totalorder %s787_s10, %s1341_s1 }
  0x1e   : > { %p790_p0 = pnand %p789_p13, %p788_p12 }
  0x20   : > { %p791_p3 = pneg %p790_p0 }
  0x22   : > { %p796_p7 = pnand %p794_p5, %p791_p3 }
  0x24   : > { %799 = shalt.err (!%p796_p7)
}
  0x25   : > { %s800_s15 = scalar_lea.vmem %s210_s30, 768  ;;  %p808_p2 = scmp.lt.s32.totalorder %s210_s30, %s210_s30 }
  0x26   : > { %p801_p9 = scmp.ne.s32.totalorder %s210_s30, %s800_s15  ;;  %p809_p6 = scmp.lt.s32.totalorder %s800_s15, %s800_s15 }
  0x28   : > { %p803_p10 = pnand %p801_p9, %p789_p13  ;;  %p810_p4 = por %p809_p6, %p808_p2 }
  0x2a   : > { %p804_p1 = pneg %p803_p10 }
  0x2c   : > { %p811_p8 = pnand %p810_p4, %p804_p1 }
  0x2e   : > { %814 = shalt.err (!%p811_p8)
}
  0x2f   : > { %s994_s16 = smov 192   ;;  %s995_s17 = smov 12  }
  0x30   : > { %706 = dma.hbm_to_vmem [thread:$0]  (!%p1094_p11), %s1341_s1, 768, %s210_s30, [#allocation6], %s994_s16, %s994_s16, %s995_s17  }
  0x31   : > { %p40_p1 = scmp.ge.s32.totalorder %s38_s7, 2  ;;  %s47_s9 = sadd.s32 1, %s979_s20 }
  0x32   : > { %p54_p2 = scmp.ne.s32.totalorder %s979_s20, %s975_s19  ;;  %p55_p4 = scmp.eq.s32.totalorder %s991_s23, 0 }
  0x33   : > { %s1363_s7 = smov (%p40_p1, %s38_s7), 0  ;;  %p1343_p8 = scmp.eq.s32.totalorder %s1064_s24, 1 }
  0x34   : > { %p1121_p6 = por %p55_p4, %p54_p2  ;;  %s42_s6 = ssub.s32 %s987_s22, %s1363_s7 }
  0x35   : > { %p1127_p10 = por %p1343_p8, %p54_p2  ;;  %p722_p12 = scmp.lt.s32.totalorder %s991_s23, 2 }
  0x36   : > { %p45_p11 = scmp.eq.s32.totalorder %s42_s6, 0  ;;  %s226_s30 = sand.u32 1, %s979_s20  }
  0x37   : > { %s656_s12 = sshll.u32 %s226_s30, 2  ;;  %s657_s14 = sshll.u32 %s987_s22, 6 }
  0x38   : > { %s1136_s13 = scalar_select %p45_p11, %s979_s20, %s47_s9  }
  0x39   : > { %s1345_s0 = sld [smem:[#allocation15_spill]]  ;;  %s230_s29 = scalar_lea.vmem [#allocation2], %s656_s12 }
  0x3a   : > { %s238_s8 = sshll.u32 %s230_s29, 4  ;;  %p1148_p13 = pnand %p722_p12, %p1121_p6  ;;  %s1144_s8 = int_to_ptr.vmem [resolvable:$true] %s238_s8 }
  0x3b   : > { %s227_s9 = scalar_lea.sflag [#allocation3], %s226_s30 }
  0x3c   : > { %p817_p3 = pneg %p1148_p13 }
  0x3f   : > { %s1142_s17 = scalar_lea.hbm %s1345_s0, %s657_s14  ;;  %s820_s15 = scalar_lea.hbm %s1345_s0, 128 }
  0x40   : > { %s815_s25 = scalar_lea.hbm %s1142_s17, 64  ;;  %p821_p9 = scmp.lt.u32.totalorder %s1142_s17, %s1345_s0 }
  0x41   : > { %p816_p0 = scmp.ne.s32.totalorder %s1142_s17, %s815_s25  ;;  %p822_p1 = scmp.lt.u32.totalorder %s820_s15, %s815_s25 }
  0x42   : > { %p824_p4 = scmp.lt.u32.totalorder %s815_s25, %s1142_s17 }
  0x43   : > { %p818_p5 = pnand %p817_p3, %p816_p0  ;;  %p823_p2 = por %p822_p1, %p821_p9 }
  0x45   : > { %p819_p7 = pneg %p818_p5  ;;  %p825_p6 = por %p824_p4, %p823_p2 }
  0x47   : > { %p826_p8 = pnand %p825_p6, %p819_p7 }
  0x49   : > { %829 = shalt.err (!%p826_p8)
}
  0x4a   : > { %s830_s30 = scalar_lea.vmem %s1144_s8, 64  ;;  %s996_s29 = smov [#allocation2]  }
  0x4b   : > { %p831_p12 = scmp.ne.s32.totalorder %s1144_s8, %s830_s30  ;;  %s835_s12 = sshll.u32 %s996_s29, 4  ;;  %s836_s12 = int_to_ptr.vmem [resolvable:$false] %s835_s12 }
  0x4c   : > { %s837_s14 = scalar_lea.vmem %s836_s12, 128  ;;  %p838_p5 = scmp.lt.s32.totalorder %s1144_s8, %s836_s12 }
  0x4d   : > { %p833_p11 = pnand %p831_p12, %p817_p3  ;;  %p839_p9 = scmp.lt.s32.totalorder %s837_s14, %s830_s30 }
  0x4f   : > { %p834_p0 = pneg %p833_p11  ;;  %p840_p1 = por %p839_p9, %p838_p5 }
  0x51   : > { %p841_p2 = pnand %p840_p1, %p834_p0 }
  0x53   : > { %844 = shalt.err (!%p841_p2)
}
  0x54   : > { %710 = dma.hbm_to_vmem [thread:$0]  (!%p1148_p13), %s1142_s17, 64, %s1144_s8, %s227_s9  }
  0x55   : > { %p1347_p7 = scmp.ne.s32.totalorder %s1339_s28, 0 }
  0x56   : > { %s1180_s25 = sand.u32 (!%p1347_p7), 1, %s975_s19   ;;  %p1348_p3 = scmp.ne.s32.totalorder (!%p1347_p7), %s1337_s26, 0 }
  0x57   : > { %247 = sbr.rel (%p1347_p7) target bundleno = 384 (0x180), region = 32  ;;  %s1183_s15 = sshll.u32 (!%p1347_p7), %s1180_s25, 2 }
  0x58   : > { %s250_s10 = scalar_lea.sflag (!%p1347_p7), [#allocation3], %s1180_s25  ;;  %s253_s16 = scalar_lea.vmem (!%p1347_p7), [#allocation2], %s1183_s15 }
  0x5e   : > { %954 = dma.done.wait (%p1348_p3), %s250_s10, 64  }
  0x5f   : > { %956 = vsyncadd (%p1348_p3), %s250_s10, 4294967232  ;;  %p1349_p13 = scmp.eq.s32.totalorder %s1064_s24, 0 }
  0x61   : > { %958 = dma.done.wait (%p1349_p13), [#allocation6], 768   ;;  %p1350_p4 = pmov %p1349_p13 }
  0x62   : > { %v997_v0 = vmov 0.0   ;;  %vm998_vm0 = vmmov 0   ;;  %v999_v1 = vmov 0   ;;  %v779_v2 = vld [vmem:[#allocation5 + $0x4] ss:$12 sps:$4 sm:$0xff]   ;;  %vm353_vm1 = vcmask 261120  }
  0x63   : > { %960 = vsyncadd (%p1350_p4), [#allocation6], 4294966528  ;;  %683 = vmatprep.subr.bf16.mxu1 %v997_v0  ;;  %687 = vmatprep.mubr.msk.bf16.mxu1 %vm998_vm0, %v997_v0  ;;  %v781_v3 = vld [vmem:[#allocation5 + $0x8] ss:$12 sps:$4 sm:$0xff]   ;;  %v782_v4 = vld [vmem:[#allocation5] ss:$12 sps:$4 sm:$0xff]   ;;  %v306_v9 = vlaneseq }
  0x64   : > { %389 = vmatprep.mubr.bf16.mxu0 %v999_v1  ;;  %357 = vmatprep.subr.bf16.mxu0 %v779_v2  ;;  %v783_v5 = vld [vmem:[#allocation5 + $0x1c] ss:$12 sps:$4 sm:$0xff]   ;;  %v785_v6 = vld [vmem:[#allocation5 + $0x20] ss:$12 sps:$4 sm:$0xff]   ;;  %v786_v7 = vld [vmem:[#allocation5 + $0x18] ss:$12 sps:$4 sm:$0xff]  }
  0x65   : > { %684 = vmatpush3.bf16.msra.mxu1 %v781_v3  ;;  %358 = vmatpush1.bf16.msra.mxu0 %v782_v4  ;;  %v295_v8 = vld [vmem:[%s253_s16] sm:$0xf]  ;;  %v307_v10 = vshrl.u32 %v306_v9, 7  ;;  %s1351_s2 = sld [smem:[#allocation17_spill]]  ;;  %s675_s8 = sshll.u32 %s983_s21, 6 }
  0x66   : > { %685 = vmatprep.subr.bf16.mxu1 %v997_v0  ;;  %359 = vmatprep.subr.bf16.mxu0 %v783_v5  ;;  %s286_s6 = scalar_lea.vmem [#allocation8], %s1183_s15  ;;  %s1333_s30 = scalar_lea.vmem [#allocation7], %s1183_s15 }
  0x67   : > { %v316_v11 = vsub.s32 2, %v307_v10  ;;  %v308_v12 = vsub.s32 0, %v307_v10  ;;  %v312_v14 = vsub.s32 1, %v307_v10  ;;  %s484_s9 = sshll.u32 %s286_s6, 4  ;;  %s470_s29 = sshll.u32 %s1333_s30, 4  ;;  %s1210_s9 = int_to_ptr.vmem [resolvable:$true] %s484_s9  ;;  %s1217_s29 = int_to_ptr.vmem [resolvable:$true] %s470_s29 }
  0x68   : > { %s1207_s21 = scalar_lea.hbm %s1327_s4, %s675_s8  ;;  %s293_s10 = scalar_lea.vmem [#allocation10], %s1183_s15 }
  0x69   : > { %686 = vmatpush3.bf16.msra.mxu1 %v785_v6  ;;  %360 = vmatpush1.bf16.msra.mxu0 %v786_v7  ;;  %s498_s16 = sshll.u32 %s293_s10, 4  ;;  %s1215_s30 = scalar_lea.hbm %s1326_s3, %s675_s8  ;;  %s1224_s16 = int_to_ptr.vmem [resolvable:$true] %s498_s16 }
  0x6a   : > { %s1222_s17 = scalar_lea.hbm %s1328_s5, %s675_s8  ;;  %s845_s1 = scalar_lea.vmem %s1210_s9, 64 }
  0x6b   : > { %v304_v13 = vld [vmem:[%s1351_s2] sm:$0x7]  ;;  %p846_p6 = scmp.ne.s32.totalorder %s1210_s9, %s845_s1  ;;  %s1000_s26 = smov [#allocation8]  }
  0x6c   : > { %688 = vmatmul.mubr.msk.bf16.vlgmr.msra.gmra.mrb[0].mxu1 %vm353_vm1, %v295_v8  ;;  %670 = vmatmul.mubr.msk.bf16.vlgmr.msra.gmra.mrb[0].mxu0 %vm353_vm1, %v295_v8  ;;  %v317_v15 = vrot.slane %v304_v13, %v316_v11  ;;  %v309_v16 = vrot.slane %v304_v13, %v308_v12  ;;  %v313_v17 = vrot.slane %v304_v13, %v312_v14  ;;  %s849_s28 = sshll.u32 %s1000_s26, 4  ;;  %s850_s28 = int_to_ptr.vmem [resolvable:$false] %s849_s28 }
  0x6d   : > { %p847_p8 = pnand %p846_p6, %p1127_p10  ;;  %s851_s2 = scalar_lea.vmem %s850_s28, 128 }
  0x6e   : > { %p852_p11 = scmp.lt.s32.totalorder %s1210_s9, %s850_s28  ;;  %p853_p0 = scmp.lt.s32.totalorder %s851_s2, %s845_s1 }
  0x6f   : > { %p848_p12 = pneg %p847_p8 }
  0x70   : > { %p854_p5 = por %p853_p0, %p852_p11 }
  0x72   : > { %p855_p9 = pnand %p854_p5, %p848_p12 }
 0x13f   : > { %v432_v18 = vpop.f32.mrb[0].mxu1  ;;  %v391_v20 = vpop.f32.mrb[0].mxu0 }
 0x140   : > { %v433_v19 = vadd.f32 %v432_v18, %v317_v15  ;;  %v689_v21 = vpop.f32.mrb[1].mxu1  ;;  %v392_v22 = vadd.f32 %v391_v20, %v309_v16  ;;  %v393_v23 = vpop.f32.mrb[1].mxu0 }
 0x141   : > { %v435_v24 = vpop.f32.mrb[2].mxu1  ;;  %v394_v26 = vadd.f32 %v393_v23, %v313_v17  ;;  %v395_v27 = vpop.f32.mrb[2].mxu0 }
 0x142   : > { %v443_v25 = vpack.c.bf16 %v433_v19, %v433_v19  ;;  %v690_v28 = vpop.f32.mrb[3].mxu1  ;;  %v438_v29 = vmul.f32 0.17677669, %v392_v22  ;;  %v396_v30 = vpop.f32.mrb[3].mxu0 }
 0x143   : > { %v441_v31 = vpack.c.bf16 %v394_v26, %v394_v26 }
 0x144   : > { %444 = vst [vmem:[%s293_s10] sm:$0xf] %v443_v25  ;;  %v439_v32 = vpack.c.bf16 %v438_v29, %v438_v29  ;;  %s1352_s10 = sand.u32 1, %s1064_s24  }
 0x145   : > { %442 = vst [vmem:[%s286_s6] sm:$0xf] %v441_v31  ;;  %s1228_s0 = scalar_lea.sflag [#allocation9], %s1352_s10 }
 0x146   : > { %858 = shalt.err (!%p855_p9)
}
 0x147   : > { %s859_s24 = scalar_lea.hbm %s1207_s21, 64  ;;  %s863_s12 = scalar_lea.hbm %s1327_s4, 128 }
 0x148   : > { %p860_p1 = scmp.ne.s32.totalorder %s1207_s21, %s859_s24  ;;  %p864_p3 = scmp.lt.u32.totalorder %s1207_s21, %s1327_s4 }
 0x149   : > { %p865_p13 = scmp.lt.u32.totalorder %s863_s12, %s859_s24  ;;  %p867_p6 = scmp.lt.u32.totalorder %s859_s24, %s1207_s21 }
 0x14a   : > { %p861_p2 = pnand %p860_p1, %p1127_p10 }
 0x14b   : > { %p866_p4 = por %p865_p13, %p864_p3 }
 0x14c   : > { %p862_p7 = pneg %p861_p2 }
 0x14d   : > { %p868_p8 = por %p867_p6, %p866_p4 }
 0x14f   : > { %p869_p12 = pnand %p868_p8, %p862_p7 }
 0x151   : > { %872 = shalt.err (!%p869_p12)
}
 0x152   : > { %698 = dma.vmem_to_hbm [thread:$0]  (%p1127_p10), %s1210_s9, 64, %s1207_s21, %s1228_s0  }
 0x153   : > { %s1353_s1 = scalar_lea.vmem [#allocation7], %s1183_s15  ;;  %s446_s2 = scalar_lea.sflag [#allocation4], %s1180_s25 }
 0x154   : > { %440 = vst [vmem:[%s1353_s1] sm:$0xf] %v439_v32  ;;  %s873_s26 = scalar_lea.vmem %s1217_s29, 64  ;;  %s1001_s28 = smov [#allocation7]  }
 0x155   : > { %p874_p11 = scmp.ne.s32.totalorder %s1217_s29, %s873_s26  ;;  %s877_s24 = sshll.u32 %s1001_s28, 4  ;;  %s878_s24 = int_to_ptr.vmem [resolvable:$false] %s877_s24 }
 0x156   : > { %s879_s8 = scalar_lea.vmem %s878_s24, 128  ;;  %p880_p9 = scmp.lt.s32.totalorder %s1217_s29, %s878_s24 }
 0x157   : > { %p875_p0 = pnand %p874_p11, %p1127_p10  ;;  %p881_p1 = scmp.lt.s32.totalorder %s879_s8, %s873_s26 }
 0x159   : > { %p876_p5 = pneg %p875_p0  ;;  %p882_p2 = por %p881_p1, %p880_p9 }
 0x15b   : > { %p883_p7 = pnand %p882_p2, %p876_p5 }
 0x15d   : > { %886 = shalt.err (!%p883_p7)
}
 0x15e   : > { %s887_s25 = scalar_lea.hbm %s1215_s30, 64  ;;  %s891_s21 = scalar_lea.hbm %s1326_s3, 128 }
 0x15f   : > { %p888_p3 = scmp.ne.s32.totalorder %s1215_s30, %s887_s25  ;;  %p892_p6 = scmp.lt.u32.totalorder %s1215_s30, %s1326_s3 }
 0x160   : > { %p893_p8 = scmp.lt.u32.totalorder %s891_s21, %s887_s25  ;;  %p895_p11 = scmp.lt.u32.totalorder %s887_s25, %s1215_s30 }
 0x161   : > { %p889_p13 = pnand %p888_p3, %p1127_p10 }
 0x162   : > { %p894_p12 = por %p893_p8, %p892_p6 }
 0x163   : > { %p890_p4 = pneg %p889_p13 }
 0x164   : > { %p896_p0 = por %p895_p11, %p894_p12 }
 0x166   : > { %p897_p5 = pnand %p896_p0, %p890_p4 }
 0x168   : > { %900 = shalt.err (!%p897_p5)
}
 0x169   : > { %697 = dma.vmem_to_hbm [thread:$0]  (%p1127_p10), %s1217_s29, 64, %s1215_s30, %s446_s2  }
 0x16a   : > { %s901_s14 = scalar_lea.vmem %s1224_s16, 64  ;;  %s1002_s10 = smov [#allocation10]  }
 0x16b   : > { %p902_p9 = scmp.ne.s32.totalorder %s1224_s16, %s901_s14  ;;  %s905_s1 = sshll.u32 %s1002_s10, 4  ;;  %s906_s1 = int_to_ptr.vmem [resolvable:$false] %s905_s1 }
 0x16c   : > { %s907_s26 = scalar_lea.vmem %s906_s1, 128  ;;  %p908_p7 = scmp.lt.s32.totalorder %s1224_s16, %s906_s1 }
 0x16d   : > { %p903_p1 = pnand %p902_p9, %p1127_p10  ;;  %p909_p3 = scmp.lt.s32.totalorder %s907_s26, %s901_s14 }
 0x16f   : > { %p904_p2 = pneg %p903_p1  ;;  %p910_p13 = por %p909_p3, %p908_p7 }
 0x171   : > { %p911_p4 = pnand %p910_p13, %p904_p2 }
 0x173   : > { %914 = shalt.err (!%p911_p4)
}
 0x174   : > { %s915_s30 = scalar_lea.hbm %s1222_s17, 64  ;;  %s919_s28 = scalar_lea.hbm %s1328_s5, 128 }
 0x175   : > { %p916_p6 = scmp.ne.s32.totalorder %s1222_s17, %s915_s30  ;;  %p920_p11 = scmp.lt.u32.totalorder %s1222_s17, %s1328_s5 }
 0x176   : > { %p921_p0 = scmp.lt.u32.totalorder %s919_s28, %s915_s30  ;;  %p923_p9 = scmp.lt.u32.totalorder %s915_s30, %s1222_s17 }
 0x177   : > { %p917_p8 = pnand %p916_p6, %p1127_p10 }
 0x178   : > { %p922_p5 = por %p921_p0, %p920_p11 }
 0x179   : > { %p918_p12 = pneg %p917_p8 }
 0x17a   : > { %p924_p1 = por %p923_p9, %p922_p5 }
 0x17c   : > { %p925_p2 = pnand %p924_p1, %p918_p12 }
 0x17e   : > { %928 = shalt.err (!%p925_p2)
}
 0x17f   : > { %699 = dma.vmem_to_hbm [thread:$0]  (%p1127_p10), %s1224_s16, 64, %s1222_s17, %s1228_s0  }
 0x180 PF: > { %s510_s25 = sand.u32 1, %s971_s18   ;;  %p1354_p7 = scmp.ne.s32.totalorder %s1338_s27, 0 }
 0x181   : > { %p1355_p3 = scmp.ge.s32.totalorder %s991_s23, 2  ;;  %s511_s15 = scalar_lea.sflag [#allocation4], %s510_s25 }
 0x183   : > { %p712_p13 = pnand %p1355_p3, %p1354_p7 }
 0x185   : > { %962 = dma.done.wait (!%p712_p13), %s511_s15, 64  }
 0x186   : > { %964 = vsyncadd (!%p712_p13), %s511_s15, 4294967232  ;;  %s1356_s9 = sadd.s32 4294967294, %s991_s23  }
 0x187   : > { %s519_s21 = sand.u32 1, %s1356_s9  }
 0x188   : > { %s520_s6 = scalar_lea.sflag [#allocation9], %s519_s21 }
 0x189   : > { %966 = dma.done.wait (!%p712_p13), %s520_s6, 128  }
 0x18a   : > { %968 = vsyncadd (!%p712_p13), %s520_s6, 4294967168  ;;  %s26_s23 = sadd.s32 1, %s991_s23   ;;  %s1357_s18 = smov %s975_s19 }
 0x18b   : > { %p23_p10 = scmp.ge.s32.totalorder %s26_s23, 4   ;;  %s1358_s19 = smov %s979_s20 }
 0x18c   : > { %s1359_s20 = smov %s1136_s13  ;;  %s1360_s21 = smov %s987_s22 }
 0x18d   : > { %s1361_s22 = smov %s1363_s7  ;;  %25 = sbr.rel (!%p23_p10) target bundleno = 13 (0xd), region = 113 }
 0x194   :  { %534 = vsyncpa [#allocation3], 1 }
 0x195   :  { %536 = vsyncpa [#allocation3 + $0x1], 1 }
 0x196   :  { %537 = vsyncpa [#allocation6], 1 }
 0x197   :  { %538 = vsyncpa [#allocation4], 1 }
 0x198   :  { %540 = vsyncpa [#allocation4 + $0x1], 1 }
 0x199   :  { %541 = vsyncpa [#allocation9], 1 }
 0x19a   :  { %543 = vsyncpa [#allocation9 + $0x1], 1 }

</bundles_post_ra>
